<compile_context>
chip_gen: v6e
topology: v6e:2x2x1
jax: 0.10.0
libtpu: 0.0.40
codegen_flags: <defaults>
</compile_context>

<pallas_src>
import functools

import jax
import jax.numpy as jnp
from jax.experimental import pallas as pl
from jax.experimental.pallas import tpu as pltpu

SMOOTH = 1e-05

# Largest batch tile (lanes) per grid step.  f32 logits tile = C*block_b*4
# (= 8 MiB at C=4) + int8 labels (0.5 MiB); double-buffered ~18 MiB, safely
# under the 48 MiB scoped-VMEM limit requested below (v7x physical = 64 MiB,
# v5e/v6e = 128 MiB).  If traces still show DMA gaps at step boundaries,
# pipeline_mode=pl.Buffered(3) on the logits spec is cheap insurance.
_MAX_BLOCK_B = 512 * 1024
_VMEM_LIMIT = 48 * 1024 * 1024


def _round_up(x, m):
    return ((x + m - 1) // m) * m


def _dice_partials_kernel(logits_ref, target_ref, inter_ref, card_ref, *,
                          batch, from_logits, needs_mask):
    # TODO(synk): v7x — pack two 128-lane batch sub-tiles onto the unused
    # sublanes (C=4 of 8) to double effective VPU throughput.
    i = pl.program_id(0)

    logits = logits_ref[...].astype(jnp.float32)                  # (C, TB)
    tgt = target_ref[...].astype(jnp.int32)                       # (1, TB)
    c, tb = logits.shape

    if from_logits:
        # numerically-stable softmax over the class (sublane) axis
        col_max = jnp.max(logits, axis=0, keepdims=True)          # (1, TB)
        e = jnp.exp(logits - col_max)                             # EUP exp
        denom = jnp.sum(e, axis=0, keepdims=True)                 # (1, TB)
        probs = e * pl.reciprocal(denom)                          # exact EUP recip
    else:
        probs = logits

    if needs_mask:
        # global batch index of each lane; the ragged last block's tail is
        # neutralized via selects (stale/NaN lanes cannot leak through).
        col_idx = jax.lax.broadcasted_iota(jnp.int32, (1, tb), 1) + i * tb
        valid = col_idx < batch                                   # (1, TB)
        tgt = jnp.where(valid, tgt, -1)                           # tail matches nothing
        probs_card = jnp.where(valid, probs, 0.0)                 # tail contributes 0
    else:
        probs_card = probs

    # one shared compare replaces the float one-hot (OOR labels match nothing)
    class_ids = jax.lax.broadcasted_iota(jnp.int32, (c, tb), 0)   # (C, TB)
    match = class_ids == tgt                                      # (C, TB) bool

    inter = jnp.sum(jnp.where(match, probs, 0.0), axis=1, keepdims=True)   # (C,1)
    card = jnp.sum(probs_card + jnp.where(match, 1.0, 0.0), axis=1,
                   keepdims=True)                                          # (C,1)

    inter_ref[0] = inter
    card_ref[0] = card


def multiclass_dice_loss(logits, target, *, smooth=SMOOTH, from_logits=True,
                         block_b=None, logits_layout="bc"):
    """Forward pass of MulticlassDiceLoss.

    logits:  (B, C) floats when logits_layout="bc" (torch layout), or an
             already class-major (C, B) array when logits_layout="cb"
             (skips the wrapper transpose = one full HBM pass over logits).
    target:  (B,) integer class labels.
    Returns a scalar float32 loss.
    """
    if logits_layout == "bc":
        b, c = logits.shape
        # TODO(synk): have producers emit (C, B) directly (logits_layout="cb");
        # this transpose is one extra full HBM read+write of the logits.
        logits_cb = jnp.transpose(logits, (1, 0))
    elif logits_layout == "cb":
        c, b = logits.shape
        logits_cb = logits
    else:
        raise ValueError(f"unknown logits_layout: {logits_layout!r}")

    if target.shape != (b,):
        raise ValueError("target must have shape (B,)")

    # narrow label stream: int8/int16 cut label HBM bytes by 4x/2x
    if c <= 127:
        tgt_dtype = jnp.int8
    elif c <= 32767:
        tgt_dtype = jnp.int16
    else:
        tgt_dtype = jnp.int32
    target_row = target.astype(tgt_dtype).reshape(1, b)

    if block_b is None:
        block_b = _MAX_BLOCK_B
    if b <= block_b:
        block_b = b                        # single block == full dim (always legal)
    else:
        block_b = _round_up(block_b, 128)  # lane-dim multiple of 128
    num_blocks = pl.cdiv(b, block_b)
    needs_mask = (num_blocks * block_b) != b

    kernel = functools.partial(_dice_partials_kernel, batch=b,
                               from_logits=from_logits, needs_mask=needs_mask)

    inter_parts, card_parts = pl.pallas_call(
        kernel,
        out_shape=(
            jax.ShapeDtypeStruct((num_blocks, c, 1), jnp.float32),
            jax.ShapeDtypeStruct((num_blocks, c, 1), jnp.float32),
        ),
        grid_spec=pltpu.PrefetchScalarGridSpec(
            num_scalar_prefetch=0,
            grid=(num_blocks,),
            in_specs=[
                pl.BlockSpec((c, block_b), lambda i: (0, i)),     # logits (C, B)
                pl.BlockSpec((1, block_b), lambda i: (0, i)),     # labels (1, B)
            ],
            out_specs=[
                pl.BlockSpec((1, c, 1), lambda i: (i, 0, 0)),     # inter partials
                pl.BlockSpec((1, c, 1), lambda i: (i, 0, 0)),     # card partials
            ],
        ),
        compiler_params=pltpu.CompilerParams(
            # blocks are independent partial sums -> megacore-parallel on v7x
            # (each TensorCore takes half the blocks); no-op on v5e/v6e.
            dimension_semantics=("parallel",),
            vmem_limit_bytes=_VMEM_LIMIT,
        ),
    )(logits_cb, target_row)

    # tiny finalize on (num_blocks, C) partials (also pairwise -> better accum)
    intersection = jnp.sum(inter_parts[:, :, 0], axis=0)          # (C,)
    cardinality = jnp.sum(card_parts[:, :, 0], axis=0)            # (C,)
    dice = (2.0 * intersection + smooth) / (cardinality + smooth)
    return 1.0 - jnp.mean(dice)


def _reference(logits, target, smooth=SMOOTH, from_logits=True):
    logits = logits.astype(jnp.float32)
    probs = jax.nn.softmax(logits, axis=1) if from_logits else logits
    onehot = jax.nn.one_hot(target, logits.shape[1], dtype=jnp.float32)
    intersection = jnp.sum(probs * onehot, axis=0)
    cardinality = jnp.sum(probs + onehot, axis=0)
    dice = (2.0 * intersection + smooth) / (cardinality + smooth)
    return 1.0 - jnp.mean(dice)


if __name__ == "__main__":
    key = jax.random.PRNGKey(0)
    k1, k2, k3, k4 = jax.random.split(key, 4)

    # small shapes consistent with (B, C) logits / (B,) labels
    B, C = 8, 4
    logits = jax.random.normal(k1, (B, C), dtype=jnp.float32)
    target = jax.random.randint(k2, (B,), 0, C, dtype=jnp.int32)

    loss = multiclass_dice_loss(logits, target)
    jax.block_until_ready(loss)
    ref = _reference(logits, target)
    assert jnp.allclose(loss, ref, atol=1e-4, rtol=1e-4), (loss, ref)

    # multi-block grid + ragged last block (300 = 2*128 + 44) + int8 labels
    B2 = 300
    logits2 = jax.random.normal(k3, (B2, C), dtype=jnp.float32)
    target2 = jax.random.randint(k4, (B2,), 0, C, dtype=jnp.int32)
    loss2 = multiclass_dice_loss(logits2, target2, block_b=128)
    jax.block_until_ready(loss2)
    ref2 = _reference(logits2, target2)
    assert jnp.allclose(loss2, ref2, atol=1e-4, rtol=1e-4), (loss2, ref2)

    # transpose-free class-major path (producer hands us (C, B) directly)
    loss3 = multiclass_dice_loss(jnp.transpose(logits2), target2,
                                 block_b=128, logits_layout="cb")
    jax.block_until_ready(loss3)
    assert jnp.allclose(loss3, ref2, atol=1e-4, rtol=1e-4), (loss3, ref2)

    # from_logits=False path (probabilities fed directly)
    probs_in = jax.nn.softmax(logits, axis=1)
    loss4 = multiclass_dice_loss(probs_in, target, from_logits=False)
    jax.block_until_ready(loss4)
    assert jnp.allclose(loss4, ref, atol=1e-4, rtol=1e-4), (loss4, ref)

    print("KERNEL_OK")
</pallas_src>

<mosaic_0001>
module attributes {stable_mosaic.version = 11 : i64} {
  func.func @_dice_partials_kernel(%arg0: i32, %arg1: memref<4x8xf32, #tpu.memory_space<vmem>>, %arg2: memref<1x8xi8, #tpu.memory_space<vmem>>, %arg3: memref<1x4x1xf32, #tpu.memory_space<vmem>>, %arg4: memref<1x4x1xf32, #tpu.memory_space<vmem>>) attributes {dimension_semantics = [#tpu.dimension_semantics<parallel>], iteration_bounds = array<i64: 1>, scalar_prefetch = 0 : i64, scratch_operands = 0 : i64, tpu.core_type = #tpu.core_type<tc>, window_params = [{transform_indices = @transform_0, window_bounds = array<i64: 4, 8>}, {transform_indices = @transform_1, window_bounds = array<i64: 1, 8>}, {transform_indices = @transform_2, window_bounds = array<i64: 1, 4, 1>}, {transform_indices = @transform_3, window_bounds = array<i64: 1, 4, 1>}]} {
    %c0 = arith.constant 0 : index
    %c0_0 = arith.constant 0 : index
    %0 = vector.load %arg1[%c0, %c0_0] : memref<4x8xf32, #tpu.memory_space<vmem>>, vector<4x8xf32>
    %c0_1 = arith.constant 0 : index
    %c0_2 = arith.constant 0 : index
    %1 = vector.load %arg2[%c0_1, %c0_2] : memref<1x8xi8, #tpu.memory_space<vmem>>, vector<1x8xi8>
    %2 = arith.extsi %1 : vector<1x8xi8> to vector<1x8xi32>
    %cst = arith.constant dense<0xFF800000> : vector<8xf32>
    %3 = vector.multi_reduction <maximumf>, %0, %cst [0] : vector<4x8xf32> to vector<8xf32>
    %4 = vector.shape_cast %3 : vector<8xf32> to vector<1x8xf32>
    %5 = vector.broadcast %4 : vector<1x8xf32> to vector<4x8xf32>
    %6 = arith.subf %0, %5 : vector<4x8xf32>
    %7 = math.exp %6 : vector<4x8xf32>
    %cst_3 = arith.constant dense<0.000000e+00> : vector<8xf32>
    %8 = vector.multi_reduction <add>, %7, %cst_3 [0] : vector<4x8xf32> to vector<8xf32>
    %9 = vector.shape_cast %8 : vector<8xf32> to vector<1x8xf32>
    %10 = tpu.reciprocal %9 : vector<1x8xf32> -> vector<1x8xf32>
    %11 = vector.broadcast %10 : vector<1x8xf32> to vector<4x8xf32>
    %12 = arith.mulf %7, %11 : vector<4x8xf32>
    %13 = tpu.iota {dimensions = array<i32: 0>} : vector<4x8xi32>
    %14 = vector.broadcast %2 : vector<1x8xi32> to vector<4x8xi32>
    %15 = arith.cmpi eq, %13, %14 : vector<4x8xi32>
    %cst_4 = arith.constant 0.000000e+00 : f32
    %16 = vector.broadcast %cst_4 : f32 to vector<4x8xf32>
    %17 = arith.select %15, %12, %16 : vector<4x8xi1>, vector<4x8xf32>
    %cst_5 = arith.constant dense<0.000000e+00> : vector<4xf32>
    %18 = vector.multi_reduction <add>, %17, %cst_5 [1] : vector<4x8xf32> to vector<4xf32>
    %19 = vector.shape_cast %18 : vector<4xf32> to vector<4x1xf32>
    %cst_6 = arith.constant 1.000000e+00 : f32
    %cst_7 = arith.constant 0.000000e+00 : f32
    %20 = vector.broadcast %cst_6 : f32 to vector<4x8xf32>
    %21 = vector.broadcast %cst_7 : f32 to vector<4x8xf32>
    %22 = arith.select %15, %20, %21 : vector<4x8xi1>, vector<4x8xf32>
    %23 = arith.addf %12, %22 : vector<4x8xf32>
    %cst_8 = arith.constant dense<0.000000e+00> : vector<4xf32>
    %24 = vector.multi_reduction <add>, %23, %cst_8 [1] : vector<4x8xf32> to vector<4xf32>
    %25 = vector.shape_cast %24 : vector<4xf32> to vector<4x1xf32>
    %c0_9 = arith.constant 0 : index
    %c0_10 = arith.constant 0 : index
    %c0_11 = arith.constant 0 : index
    %26 = vector.load %arg3[%c0_9, %c0_10, %c0_11] : memref<1x4x1xf32, #tpu.memory_space<vmem>>, vector<1x4x1xf32>
    %27 = vector.shape_cast %26 : vector<1x4x1xf32> to vector<4x1xf32>
    %28 = vector.shape_cast %19 : vector<4x1xf32> to vector<1x4x1xf32>
    tpu.vector_store %arg3[%c0_9, %c0_10, %c0_11], %28 {strides = array<i32>} : memref<1x4x1xf32, #tpu.memory_space<vmem>>, vector<1x4x1xf32>,
    %c0_12 = arith.constant 0 : index
    %c0_13 = arith.constant 0 : index
    %c0_14 = arith.constant 0 : index
    %29 = vector.load %arg4[%c0_12, %c0_13, %c0_14] : memref<1x4x1xf32, #tpu.memory_space<vmem>>, vector<1x4x1xf32>
    %30 = vector.shape_cast %29 : vector<1x4x1xf32> to vector<4x1xf32>
    %31 = vector.shape_cast %25 : vector<4x1xf32> to vector<1x4x1xf32>
    tpu.vector_store %arg4[%c0_12, %c0_13, %c0_14], %31 {strides = array<i32>} : memref<1x4x1xf32, #tpu.memory_space<vmem>>, vector<1x4x1xf32>,
    return
  }
  func.func @transform_0(%arg0: i32) -> (i32, i32) {
    %c0_i32 = arith.constant 0 : i32
    %c0_i32_0 = arith.constant 0 : i32
    return %c0_i32, %arg0 : i32, i32
  }
  func.func @transform_1(%arg0: i32) -> (i32, i32) {
    %c0_i32 = arith.constant 0 : i32
    %c0_i32_0 = arith.constant 0 : i32
    return %c0_i32, %arg0 : i32, i32
  }
  func.func @transform_2(%arg0: i32) -> (i32, i32, i32) {
    %c0_i32 = arith.constant 0 : i32
    %c0_i32_0 = arith.constant 0 : i32
    %c0_i32_1 = arith.constant 0 : i32
    return %arg0, %c0_i32, %c0_i32_0 : i32, i32, i32
  }
  func.func @transform_3(%arg0: i32) -> (i32, i32, i32) {
    %c0_i32 = arith.constant 0 : i32
    %c0_i32_0 = arith.constant 0 : i32
    %c0_i32_1 = arith.constant 0 : i32
    return %arg0, %c0_i32, %c0_i32_0 : i32, i32, i32
  }
}

</mosaic_0001>

<bundles_post_ra>
// kernel: tpu_custom_call.1
= control target key start
LH: loop header
LB: loop body
LE: loop exit
PB: predicated region body
PF: predicated region fallthrough
CT: control target
= control target key end

     0   :  { %9 = vsyncpa [#allocation3], 0  ;;  %s104_s12 = smov [#allocation2]   ;;  %s142_s0 = inlined_call_operand.hbm [shape: f32[4,8], index: 0, kind: input, shape index: {}]   ;;  %s143_s1 = inlined_call_operand.vmem [shape: s8[1,8], index: 1, kind: input, shape index: {}]   ;;  %s144_s2 = inlined_call_operand.vmem [shape: f32[1,4,1], index: 2, kind: output, shape index: {0}]   ;;  %s145_s3 = inlined_call_operand.vmem [shape: f32[1,4,1], index: 3, kind: output, shape index: {1}]  }
   0x1   :  { %s16_s13 = sshll.u32 %s104_s12, 4  ;;  %s17_s13 = int_to_ptr.vmem [resolvable:$true] %s16_s13 }
   0x2   :  { %s90_s14 = scalar_lea.vmem %s17_s13, 64  ;;  %p95_p1 = scmp.lt.s32.totalorder %s17_s13, %s17_s13 }
   0x3   :  { %p91_p0 = scmp.ne.s32.totalorder %s17_s13, %s90_s14  ;;  %p96_p2 = scmp.lt.s32.totalorder %s90_s14, %s90_s14 }
   0x5   :  { %p97_p3 = por %p96_p2, %p95_p1 }
   0x7   :  { %p98_p4 = pnand %p97_p3, %p91_p0 }
   0x9   :  { %101 = shalt.err (!%p98_p4)
}
   0xa   :  { %19 = dma.hbm_to_vmem [thread:$0]  %s142_s0, 64, %s17_s13, [#allocation3]  }
   0xb   :  { %102 = dma.done.wait [#allocation3], 64  }
   0xc   :  { %103 = vsyncadd [#allocation3], 4294967232  ;;  %vm28_vm0 = vcmask 60416   ;;  %v25_v0 = vld [vmem:[#allocation2] sm:$0xf]  ;;  %v48_v17 = vlaneseq  ;;  %v105_v25 = vmov 0.0  }
   0xd   :  { %v29_v1 = vsel %vm28_vm0, %v25_v0, -inf  ;;  %v26_v20 = vld [vmem:[%s143_s1] sm:$0x1]  ;;  %vm64_vm2 = vcmask 3072  }
   0xe   :  { %v30_v2 = vrot.slane %v29_v1, 4  ;;  %v49_v19 = vshrl.u32 %v48_v17, 7  ;;  %v27_v21 = vunpack.c.0.s8 %v26_v20 }
  0x10   :  { %v31_v3 = vmax.f32 %v29_v1, %v30_v2  ;;  %v52_v22 = vsub.s32 0, %v49_v19 }
  0x12   :  { %v32_v4 = vrot.slane %v31_v3, 2  ;;  %v53_v23 = vrot.slane %v27_v21, %v52_v22 }
  0x14   :  { %v33_v5 = vmax.f32 %v31_v3, %v32_v4  ;;  %vm54_vm1 = vcmp.eq.s32.totalorder %v49_v19, %v53_v23 }
  0x15   :  { %v59_v26 = vsel %vm54_vm1, 1.0, %v105_v25 }
  0x16   :  { %v34_v6 = vrot.slane %v33_v5, 1 }
  0x18   :  { %v35_v7 = vmax.f32 %v33_v5, %v34_v6 }
  0x1a   :  { %v36_v8 = vsub.f32 %v25_v0, %v35_v7 }
  0x1c   :  { %v37_v9 = vmul.f32 1.442695, %v36_v8 }
  0x1e   :  { %78 = vpow2.f32 %v37_v9 }
  0x2b   :  { %v79_v10 = vpop.eup %78 }
  0x2c   :  { %v39_v11 = vsel %vm28_vm0, %v79_v10, 0.0 }
  0x2d   :  { %v40_v12 = vrot.slane %v39_v11, 4 }
  0x2f   :  { %v41_v13 = vadd.f32 %v40_v12, %v39_v11 }
  0x31   :  { %v42_v14 = vrot.slane %v41_v13, 2 }
  0x33   :  { %v43_v15 = vadd.f32 %v42_v14, %v41_v13 }
  0x35   :  { %v44_v16 = vrot.slane %v43_v15, 1 }
  0x37   :  { %v45_v18 = vadd.f32 %v44_v16, %v43_v15 }
  0x39   :  { %80 = vrcp.f32 %v45_v18 }
  0x46   :  { %v81_v24 = vpop.eup %80 }
  0x47   :  { %v47_v27 = vmul.f32 %v81_v24, %v79_v10 }
  0x49   :  { %v55_v28 = vsel %vm54_vm1, %v47_v27, 0.0  ;;  %v60_v29 = vadd.f32 %v59_v26, %v47_v27 }
  0x4a   :  { %v56_v30 = vsel %vm28_vm0, %v55_v28, 0.0 }
  0x4b   :  { %57 = vadd.xlane.f32.xlu0 %v56_v30  ;;  %v61_v31 = vsel %vm28_vm0, %v60_v29, 0.0 }
  0x4f   :  { %62 = vadd.xlane.f32.xlu0 %v61_v31 }
  0xd4   :  { %v58_v32 = vpop.xlane.xlu0 %57 }
  0xd5   :  { %65 = vst.msk [vmem:[%s144_s2] sm:$0xf] %vm64_vm2, %v58_v32 }
  0xd8   :  { %v63_v33 = vpop.xlane.xlu0 %62 }
  0xd9   :  { %66 = vst.msk [vmem:[%s145_s3] sm:$0xf] %vm64_vm2, %v63_v33 }
  0xda   :  { %75 = vsyncpa [#allocation3], 1 }

</bundles_post_ra>
